<compile_context>
chip_gen: v7x
topology: tpu7x:2x2x1
jax: 0.10.0
libtpu: 0.0.40
codegen_flags: <defaults>
</compile_context>

<pallas_src>
import jax
import jax.numpy as jnp
from jax import lax
from jax.experimental import pallas as pl
from jax.experimental.pallas import tpu as pltpu


def _make_cross_attention_kernel(bs: int, n_entities: int,
                                 entity_embed_dim: int, attn_embed_dim: int):
    """Fused CrossAttention kernel. All shape parameters are static."""
    rows = bs * n_entities

    def kernel(dec_ref, skl_ref, wq_ref, wk_ref, bq_ref, bk_ref, o_ref):
        dec = dec_ref[...]                                   # (bs, N, E) queries AND values
        skl = skl_ref[...]                                   # (bs, N, E) keys

        # ---- fused Q/K projections: one MXU dot each over all batches ----
        # (bs, N, E) -> (bs*N, E): merges leading dims only; sublane dim stays
        # a full (8,128) tile multiple, so this reshape is layout-free.
        dec2 = dec.reshape(rows, entity_embed_dim)
        skl2 = skl.reshape(rows, entity_embed_dim)
        # wq/bq already carry the 1/sqrt(A) factor (folded in prepare_params).
        q2 = jnp.dot(dec2, wq_ref[...], preferred_element_type=jnp.float32) + bq_ref[...]
        k2 = jnp.dot(skl2, wk_ref[...], preferred_element_type=jnp.float32) + bk_ref[...]
        q = q2.reshape(bs, n_entities, attn_embed_dim)        # (bs, N, A) (pre-scaled)
        k = k2.reshape(bs, n_entities, attn_embed_dim)        # (bs, N, A)

        # ---- scores: s[b, j, i] = energy[b, i, j] = k[b,j,:] . q_scaled[b,i,:]
        s = jnp.einsum('bja,bia->bji', k, q,
                       preferred_element_type=jnp.float32)    # (bs, N, N)

        # softmax over i  (== torch F.softmax(energy, dim=1))
        s_max = jnp.max(s, axis=-1, keepdims=True)
        p = jnp.exp(s - s_max)
        p = p / jnp.sum(p, axis=-1, keepdims=True)

        # ---- value matmul: out[b, j, :] = sum_i p[b, j, i] * dec[b, i, :] ----
        out = jnp.einsum('bji,bie->bje', p, dec,
                         preferred_element_type=jnp.float32)  # (bs, N, E)

        # Single lane-dense store of the final result.
        o_ref[...] = out.astype(o_ref.dtype)

    return kernel


def prepare_params(wq, bq, wk, bk):
    """One-time parameter prep, hoisted off the per-call hot path.

    PyTorch nn.Linear stores weight as [A, E]; keep it resident as [E, A] plus
    [1, A] bias rows so the kernel does plain x @ W_T + b with no per-call
    transpose/reshape. The 1/sqrt(attn_embed_dim) score scale is folded into
    the query weight/bias here (mathematically identical to scaling Q)."""
    attn_embed_dim = wq.shape[0]
    scale = 1.0 / (float(attn_embed_dim) ** 0.5)
    wq_t = (wq * scale).T                 # (E, A), pre-scaled
    bq_row = (bq * scale).reshape(1, -1)  # (1, A), pre-scaled
    wk_t = wk.T                           # (E, A)
    bk_row = bk.reshape(1, -1)            # (1, A)
    return wq_t, bq_row, wk_t, bk_row


@jax.jit
def cross_attention_forward(dec_emb, skill_emb_list, wq_t, bq_row, wk_t, bk_row):
    """dec_emb: [bs, N, E]; skill_emb_list: sequence of [bs, n_i, E] chunks with
    sum(n_i) == N (mirrors `th.cat(skill_emb, dim=1)`); params pre-transposed /
    pre-scaled via `prepare_params`. Returns attn_out [bs, N, E]."""
    skill_emb = jnp.concatenate(list(skill_emb_list), axis=1)       # [bs, N, E]
    bs, n_entities, entity_embed_dim = dec_emb.shape
    attn_embed_dim = wq_t.shape[1]

    def vmem_spec():
        return pl.BlockSpec(memory_space=pltpu.MemorySpace.VMEM)

    return pl.pallas_call(
        _make_cross_attention_kernel(bs, n_entities, entity_embed_dim,
                                     attn_embed_dim),
        out_shape=jax.ShapeDtypeStruct(
            (bs, n_entities, entity_embed_dim), dec_emb.dtype),
        in_specs=[vmem_spec() for _ in range(6)],
        out_specs=vmem_spec(),
    )(dec_emb, skill_emb, wq_t, wk_t, bq_row, bk_row)


def cross_attention_reference(dec_emb, skill_emb_list, wq, bq, wk, bk):
    """Plain-JAX mirror of the PyTorch forward, for correctness checking."""
    skill_emb = jnp.concatenate(list(skill_emb_list), axis=1)
    attn_embed_dim = wq.shape[0]
    hp = lax.Precision.HIGHEST
    q = jnp.einsum("bne,ae->bna", dec_emb, wq, precision=hp) + bq
    k = jnp.einsum("bne,ae->bna", skill_emb, wk, precision=hp) + bk
    energy = jnp.einsum("bia,bja->bij", q / (float(attn_embed_dim) ** 0.5), k,
                        precision=hp)
    attn_score = jax.nn.softmax(energy, axis=1)          # softmax over dim=1
    attn_out = jnp.einsum("bie,bij->bje", dec_emb, attn_score, precision=hp)
    return attn_out


if __name__ == "__main__":
    # Small shapes consistent with the module:
    #   n_entities = n_agents + n_enemies, entity_embed_dim = 128 (lane-dense),
    #   attn_embed_dim = 64, bs = 2.
    bs = 2
    n_agents, n_enemies = 3, 5
    n_entities = n_agents + n_enemies          # 8
    entity_embed_dim = 128
    attn_embed_dim = 64

    key = jax.random.PRNGKey(0)
    k1, k2, k3, k4, k5, k6, k7 = jax.random.split(key, 7)

    dec_emb = jax.random.normal(
        k1, (bs, n_entities, entity_embed_dim), dtype=jnp.float32)
    # skill_emb arrives as a list and is concatenated along the entity axis,
    # mirroring `th.cat(skill_emb, dim=1)` in the PyTorch forward.
    skill_emb_list = (
        jax.random.normal(k2, (bs, n_agents, entity_embed_dim), dtype=jnp.float32),
        jax.random.normal(k3, (bs, n_enemies, entity_embed_dim), dtype=jnp.float32),
    )

    # Deterministic synthetic parameters (PyTorch Linear-style uniform init).
    bound = 1.0 / (float(entity_embed_dim) ** 0.5)
    wq = jax.random.uniform(k4, (attn_embed_dim, entity_embed_dim),
                            minval=-bound, maxval=bound, dtype=jnp.float32)
    bq = jax.random.uniform(k5, (attn_embed_dim,),
                            minval=-bound, maxval=bound, dtype=jnp.float32)
    wk = jax.random.uniform(k6, (attn_embed_dim, entity_embed_dim),
                            minval=-bound, maxval=bound, dtype=jnp.float32)
    bk = jax.random.uniform(k7, (attn_embed_dim,),
                            minval=-bound, maxval=bound, dtype=jnp.float32)

    # One-time prep (transpose / bias-reshape / score-scale fold hoisted
    # out of the hot path).
    wq_t, bq_row, wk_t, bk_row = prepare_params(wq, bq, wk, bk)

    attn_out = cross_attention_forward(
        dec_emb, skill_emb_list, wq_t, bq_row, wk_t, bk_row)
    attn_out = jax.block_until_ready(attn_out)

    ref = cross_attention_reference(dec_emb, skill_emb_list, wq, bq, wk, bk)

    assert attn_out.shape == (bs, n_entities, entity_embed_dim)
    # Tolerance leaves headroom for MXU f32 pass-decomposition and the
    # (mathematically exact) weight-side scale fold vs the HIGHEST-precision
    # XLA reference; real bugs (wrong axis/transpose/bias) would show errors
    # orders of magnitude larger.
    assert jnp.allclose(attn_out, ref, atol=1e-3, rtol=1e-3), \
        float(jnp.max(jnp.abs(attn_out - ref)))

    print("KERNEL_OK")
</pallas_src>

<mosaic_0001>
module attributes {stable_mosaic.version = 11 : i64} {
  func.func @kernel(%arg0: memref<2x8x128xf32, #tpu.memory_space<vmem>>, %arg1: memref<2x8x128xf32, #tpu.memory_space<vmem>>, %arg2: memref<128x64xf32, #tpu.memory_space<vmem>>, %arg3: memref<128x64xf32, #tpu.memory_space<vmem>>, %arg4: memref<1x64xf32, #tpu.memory_space<vmem>>, %arg5: memref<1x64xf32, #tpu.memory_space<vmem>>, %arg6: memref<2x8x128xf32, #tpu.memory_space<vmem>>) attributes {dimension_semantics = [], scalar_prefetch = 0 : i64, scratch_operands = 0 : i64, tpu.core_type = #tpu.core_type<tc>} {
    %c0 = arith.constant 0 : index
    %c0_0 = arith.constant 0 : index
    %c0_1 = arith.constant 0 : index
    %0 = vector.load %arg0[%c0, %c0_0, %c0_1] : memref<2x8x128xf32, #tpu.memory_space<vmem>>, vector<2x8x128xf32>
    %c0_2 = arith.constant 0 : index
    %c0_3 = arith.constant 0 : index
    %c0_4 = arith.constant 0 : index
    %1 = vector.load %arg1[%c0_2, %c0_3, %c0_4] : memref<2x8x128xf32, #tpu.memory_space<vmem>>, vector<2x8x128xf32>
    %2 = vector.shape_cast %0 : vector<2x8x128xf32> to vector<16x128xf32>
    %3 = vector.shape_cast %1 : vector<2x8x128xf32> to vector<16x128xf32>
    %c0_5 = arith.constant 0 : index
    %c0_6 = arith.constant 0 : index
    %4 = vector.load %arg2[%c0_5, %c0_6] : memref<128x64xf32, #tpu.memory_space<vmem>>, vector<128x64xf32>
    %cst = arith.constant dense<0.000000e+00> : vector<16x64xf32>
    %5 = tpu.matmul %2, %4, %cst {dimension_numbers = #tpu.dot_dimension_numbers<[1], [0], [0], [1], [0, 0, 1, 1], [], []>} : vector<16x128xf32>, vector<128x64xf32>, vector<16x64xf32> -> vector<16x64xf32>
    %c0_7 = arith.constant 0 : index
    %c0_8 = arith.constant 0 : index
    %6 = vector.load %arg4[%c0_7, %c0_8] : memref<1x64xf32, #tpu.memory_space<vmem>>, vector<1x64xf32>
    %7 = vector.broadcast %6 : vector<1x64xf32> to vector<16x64xf32>
    %8 = arith.addf %5, %7 : vector<16x64xf32>
    %c0_9 = arith.constant 0 : index
    %c0_10 = arith.constant 0 : index
    %9 = vector.load %arg3[%c0_9, %c0_10] : memref<128x64xf32, #tpu.memory_space<vmem>>, vector<128x64xf32>
    %cst_11 = arith.constant dense<0.000000e+00> : vector<16x64xf32>
    %10 = tpu.matmul %3, %9, %cst_11 {dimension_numbers = #tpu.dot_dimension_numbers<[1], [0], [0], [1], [0, 0, 1, 1], [], []>} : vector<16x128xf32>, vector<128x64xf32>, vector<16x64xf32> -> vector<16x64xf32>
    %c0_12 = arith.constant 0 : index
    %c0_13 = arith.constant 0 : index
    %11 = vector.load %arg5[%c0_12, %c0_13] : memref<1x64xf32, #tpu.memory_space<vmem>>, vector<1x64xf32>
    %12 = vector.broadcast %11 : vector<1x64xf32> to vector<16x64xf32>
    %13 = arith.addf %10, %12 : vector<16x64xf32>
    %14 = vector.shape_cast %8 : vector<16x64xf32> to vector<2x8x64xf32>
    %15 = vector.shape_cast %13 : vector<16x64xf32> to vector<2x8x64xf32>
    "tpu.trace_start"() <{level = 10 : i32, message = "bja,bia->bji"}> : () -> ()
    %cst_14 = arith.constant dense<0.000000e+00> : vector<2x8x8xf32>
    %16 = tpu.matmul %15, %14, %cst_14 {dimension_numbers = #tpu.dot_dimension_numbers<[2], [2], [1], [1], [0, 0, 0, 1, 1, 1], [0], [0]>} : vector<2x8x64xf32>, vector<2x8x64xf32>, vector<2x8x8xf32> -> vector<2x8x8xf32>
    "tpu.trace_stop"() : () -> ()
    %cst_15 = arith.constant dense<0xFF800000> : vector<2x8xf32>
    %17 = vector.multi_reduction <maximumf>, %16, %cst_15 [2] : vector<2x8x8xf32> to vector<2x8xf32>
    %18 = vector.shape_cast %17 : vector<2x8xf32> to vector<2x8x1xf32>
    %19 = vector.broadcast %18 : vector<2x8x1xf32> to vector<2x8x8xf32>
    %20 = arith.subf %16, %19 : vector<2x8x8xf32>
    %21 = math.exp %20 : vector<2x8x8xf32>
    %cst_16 = arith.constant dense<0.000000e+00> : vector<2x8xf32>
    %22 = vector.multi_reduction <add>, %21, %cst_16 [2] : vector<2x8x8xf32> to vector<2x8xf32>
    %23 = vector.shape_cast %22 : vector<2x8xf32> to vector<2x8x1xf32>
    %24 = vector.broadcast %23 : vector<2x8x1xf32> to vector<2x8x8xf32>
    %25 = arith.divf %21, %24 : vector<2x8x8xf32>
    "tpu.trace_start"() <{level = 10 : i32, message = "bji,bie->bje"}> : () -> ()
    %cst_17 = arith.constant dense<0.000000e+00> : vector<2x8x128xf32>
    %26 = tpu.matmul %25, %0, %cst_17 {dimension_numbers = #tpu.dot_dimension_numbers<[2], [1], [1], [2], [0, 0, 0, 1, 1, 2], [0], [0]>} : vector<2x8x8xf32>, vector<2x8x128xf32>, vector<2x8x128xf32> -> vector<2x8x128xf32>
    "tpu.trace_stop"() : () -> ()
    %c0_18 = arith.constant 0 : index
    %c0_19 = arith.constant 0 : index
    %c0_20 = arith.constant 0 : index
    %27 = vector.load %arg6[%c0_18, %c0_19, %c0_20] : memref<2x8x128xf32, #tpu.memory_space<vmem>>, vector<2x8x128xf32>
    tpu.vector_store %arg6[%c0_18, %c0_19, %c0_20], %26 {strides = array<i32>} : memref<2x8x128xf32, #tpu.memory_space<vmem>>, vector<2x8x128xf32>,
    return
  }
}

</mosaic_0001>

<bundles_post_ra>
// kernel: cross_attention_forward.1
= control target key start
LH: loop header
LB: loop body
LE: loop exit
PB: predicated region body
PF: predicated region fallthrough
CT: control target
= control target key end

     0   :  { %s987_s0 = inlined_call_operand.vmem [shape: f32[2,8,128], index: 0, kind: input, shape index: {}]   ;;  %s988_s1 = inlined_call_operand.vmem [shape: f32[2,8,128], index: 1, kind: input, shape index: {}]   ;;  %s989_s2 = inlined_call_operand.vmem [shape: f32[128,64], index: 2, kind: input, shape index: {}]   ;;  %s990_s3 = inlined_call_operand.vmem [shape: f32[128,64], index: 3, kind: input, shape index: {}]   ;;  %s991_s4 = inlined_call_operand.vmem [shape: f32[1,64], index: 4, kind: input, shape index: {}]   ;;  %s992_s5 = inlined_call_operand.vmem [shape: f32[1,64], index: 5, kind: input, shape index: {}]   ;;  %s993_s6 = inlined_call_operand.hbm [shape: f32[2,8,128], index: 6, kind: output, shape index: {}]  }
   0x1   :  { %v28_v0 = vld [vmem:[%s989_s2] sm:$0xff]  ;;  %v29_v1 = vld [vmem:[%s989_s2 + $0x8] sm:$0xff]  ;;  %v30_v5 = vld [vmem:[%s989_s2 + $0x10] sm:$0xff] }
   0x2   :  { %v126_v2 = vld [vmem:[%s990_s3] sm:$0xff]  ;;  %v706_v3 = vpack.c.bf16 %v29_v1, %v28_v0  ;;  %v127_v4 = vld [vmem:[%s990_s3 + $0x8] sm:$0xff]  ;;  %v31_v6 = vld [vmem:[%s989_s2 + $0x18] sm:$0xff] }
   0x3   :  { %v738_v7 = vpack.c.bf16 %v127_v4, %v126_v2  ;;  %v710_v8 = vpack.c.bf16 %v31_v6, %v30_v5  ;;  %v128_v9 = vld [vmem:[%s990_s3 + $0x10] sm:$0xff]  ;;  %v129_v10 = vld [vmem:[%s990_s3 + $0x18] sm:$0xff]  ;;  %v32_v11 = vld [vmem:[%s989_s2 + $0x20] sm:$0xff] }
   0x4   :  { %707 = vmatprep.subr.bf16.mxu0 %v706_v3  ;;  %v742_v12 = vpack.c.bf16 %v129_v10, %v128_v9  ;;  %v33_v13 = vld [vmem:[%s989_s2 + $0x28] sm:$0xff]  ;;  %v130_v14 = vld [vmem:[%s990_s3 + $0x20] sm:$0xff]  ;;  %v34_v18 = vld [vmem:[%s989_s2 + $0x30] sm:$0xff] }
   0x5   :  { %v131_v15 = vld [vmem:[%s990_s3 + $0x28] sm:$0xff]  ;;  %709 = vmatpush3.bf16.msra.mxu0 %v706_v3  ;;  %739 = vmatprep.subr.bf16.mxu1 %v738_v7  ;;  %v714_v16 = vpack.c.bf16 %v33_v13, %v32_v11  ;;  %v35_v19 = vld [vmem:[%s989_s2 + $0x38] sm:$0xff]  ;;  %v132_v20 = vld [vmem:[%s990_s3 + $0x30] sm:$0xff] }
   0x6   :  { %711 = vmatprep.subr.bf16.mxu0 %v710_v8  ;;  %741 = vmatpush3.bf16.msra.mxu1 %v738_v7  ;;  %v746_v17 = vpack.c.bf16 %v131_v15, %v130_v14  ;;  %v133_v21 = vld [vmem:[%s990_s3 + $0x38] sm:$0xff]  ;;  %v718_v22 = vpack.c.bf16 %v35_v19, %v34_v18  ;;  %v36_v24 = vld [vmem:[%s989_s2 + $0x40] sm:$0xff]  ;;  %v37_v25 = vld [vmem:[%s989_s2 + $0x48] sm:$0xff] }
   0x7   :  { %743 = vmatprep.subr.bf16.mxu1 %v742_v12  ;;  %v750_v23 = vpack.c.bf16 %v133_v21, %v132_v20  ;;  %v904_v26 = vld [vmem:[%s987_s0] sm:$0xff]  ;;  %v135_v28 = vld [vmem:[%s990_s3 + $0x48] sm:$0xff] }
   0x8   :  { %v134_v27 = vld [vmem:[%s990_s3 + $0x40] sm:$0xff]  ;;  %648 = vmatprep.mubr.f32.mxu0 %v904_v26 }
   0x9   :  { %713 = vmatpush3.bf16.msra.mxu0 %v710_v8  ;;  %v26_v29 = vld [vmem:[%s988_s1] sm:$0xff] }
   0xa   :  { %715 = vmatprep.subr.bf16.mxu0 %v714_v16  ;;  %745 = vmatpush3.bf16.msra.mxu1 %v742_v12 }
   0xb   :  { %747 = vmatprep.subr.bf16.mxu1 %v746_v17  ;;  %683 = vmatprep.mubr.f32.mxu1 %v26_v29 }
   0xd   :  { %717 = vmatpush3.bf16.msra.mxu0 %v714_v16 }
   0xe   :  { %11 = vsyncpa [#allocation3], 0  ;;  %719 = vmatprep.subr.bf16.mxu0 %v718_v22  ;;  %749 = vmatpush3.bf16.msra.mxu1 %v746_v17  ;;  %v722_v30 = vpack.c.bf16 %v37_v25, %v36_v24  ;;  %v754_v31 = vpack.c.bf16 %v135_v28, %v134_v27  ;;  %v38_v32 = vld [vmem:[%s989_s2 + $0x50] sm:$0xff]  ;;  %v39_v33 = vld [vmem:[%s989_s2 + $0x58] sm:$0xff]  ;;  %v807_v52 = vmov 0.0   ;;  %vm808_vm0 = vmmov 0  }
   0xf   :  { %751 = vmatprep.subr.bf16.mxu1 %v750_v23  ;;  %v136_v34 = vld [vmem:[%s990_s3 + $0x50] sm:$0xff]  ;;  %v137_v35 = vld [vmem:[%s990_s3 + $0x58] sm:$0xff]  ;;  %v726_v36 = vpack.c.bf16 %v39_v33, %v38_v32  ;;  %v40_v38 = vld [vmem:[%s989_s2 + $0x60] sm:$0xff]  ;;  %vm224_vm1 = vcmask 523264   ;;  %vm377_vm2 = vcmask 64512  }
  0x10   :  { %v758_v37 = vpack.c.bf16 %v137_v35, %v136_v34  ;;  %v41_v39 = vld [vmem:[%s989_s2 + $0x68] sm:$0xff]  ;;  %v138_v40 = vld [vmem:[%s990_s3 + $0x60] sm:$0xff]  ;;  %v42_v44 = vld [vmem:[%s989_s2 + $0x70] sm:$0xff] }
  0x11   :  { %721 = vmatpush3.bf16.msra.mxu0 %v718_v22  ;;  %v139_v41 = vld [vmem:[%s990_s3 + $0x68] sm:$0xff]  ;;  %v730_v42 = vpack.c.bf16 %v41_v39, %v40_v38  ;;  %v43_v45 = vld [vmem:[%s989_s2 + $0x78] sm:$0xff]  ;;  %v140_v46 = vld [vmem:[%s990_s3 + $0x70] sm:$0xff] }
  0x12   :  { %723 = vmatprep.subr.bf16.mxu0 %v722_v30  ;;  %753 = vmatpush3.bf16.msra.mxu1 %v750_v23  ;;  %v762_v43 = vpack.c.bf16 %v139_v41, %v138_v40  ;;  %v141_v47 = vld [vmem:[%s990_s3 + $0x78] sm:$0xff]  ;;  %v734_v48 = vpack.c.bf16 %v43_v45, %v42_v44  ;;  %v25_v50 = vld [vmem:[%s987_s0 + $0x8] sm:$0xff]  ;;  %v564_v53 = vld [vmem:[%s991_s4] ss:$0 sm:$0xff] }
  0x13   :  { %755 = vmatprep.subr.bf16.mxu1 %v754_v31  ;;  %v766_v49 = vpack.c.bf16 %v141_v47, %v140_v46  ;;  %v27_v51 = vld [vmem:[%s988_s1 + $0x8] sm:$0xff]  ;;  %v565_v54 = vld [vmem:[%s992_s5] ss:$0 sm:$0xff]  ;;  %s809_s1 = smov [#allocation2]  }
  0x14   :  { %s553_s4 = sshll.u32 %s809_s1, 4  ;;  %s554_s4 = int_to_ptr.vmem [resolvable:$true] %s553_s4 }
  0x15   :  { %725 = vmatpush3.bf16.msra.mxu0 %v722_v30  ;;  %s783_s5 = scalar_lea.vmem %s554_s4, 256  ;;  %p788_p1 = scmp.lt.s32.totalorder %s554_s4, %s554_s4 }
  0x16   :  { %727 = vmatprep.subr.bf16.mxu0 %v726_v36  ;;  %757 = vmatpush3.bf16.msra.mxu1 %v754_v31  ;;  %p784_p0 = scmp.ne.s32.totalorder %s554_s4, %s783_s5  ;;  %p789_p2 = scmp.lt.s32.totalorder %s783_s5, %s783_s5 }
  0x17   :  { %759 = vmatprep.subr.bf16.mxu1 %v758_v37 }
  0x18   :  { %p790_p3 = por %p789_p2, %p788_p1 }
  0x19   :  { %729 = vmatpush3.bf16.msra.mxu0 %v726_v36 }
  0x1a   :  { %731 = vmatprep.subr.bf16.mxu0 %v730_v42  ;;  %761 = vmatpush3.bf16.msra.mxu1 %v758_v37  ;;  %p791_p4 = pnand %p790_p3, %p784_p0 }
  0x1b   :  { %763 = vmatprep.subr.bf16.mxu1 %v762_v43 }
  0x1d   :  { %733 = vmatpush3.bf16.msra.mxu0 %v730_v42 }
  0x1e   :  { %735 = vmatprep.subr.bf16.mxu0 %v734_v48  ;;  %765 = vmatpush3.bf16.msra.mxu1 %v762_v43 }
  0x1f   :  { %767 = vmatprep.subr.bf16.mxu1 %v766_v49 }
  0x21   :  { %737 = vmatpush3.bf16.msra.mxu0 %v734_v48 }
  0x22   :  { %769 = vmatpush3.bf16.msra.mxu1 %v766_v49  ;;  %686 = vmatprep.subr.mxu0 %v807_v52 }
  0x23   :  { %691 = vmatprep.subr.mxu1 %v807_v52 }
  0x24   :  { %649 = vmatmul.mubr.f32.vlgmr.msra.gmra.mrb[0].mxu0 %v25_v50 }
  0x25   :  { %684 = vmatmul.mubr.f32.vlgmr.msra.gmra.mrb[0].mxu1 %v27_v51  ;;  %688 = vmatprep.mubr.msk.f32.mxu0 %vm808_vm0, %v807_v52 }
  0x26   :  { %693 = vmatprep.mubr.msk.f32.mxu1 %vm808_vm0, %v807_v52 }
  0xf7   :  { %v650_v55 = vpop.f32.mrb[0].mxu0 }
  0xf8   :  { %v123_v56 = vadd.f32 %v650_v55, %v564_v53  ;;  %v117_v57 = vpop.f32.mrb[1].mxu0  ;;  %v685_v58 = vpop.f32.mrb[0].mxu1 }
  0xf9   :  { %v118_v59 = vadd.f32 %v564_v53, %v117_v57  ;;  %v221_v60 = vadd.f32 %v685_v58, %v565_v54  ;;  %v215_v61 = vpop.f32.mrb[1].mxu1 }
  0xfa   :  { %692 = vmatpush3.xpose.msk.msra.mxu1 %vm224_vm1, %v123_v56  ;;  %v216_v62 = vadd.f32 %v565_v54, %v215_v61 }
  0xfb   :  { %687 = vmatpush3.xpose.msk.msra.mxu0 %vm224_vm1, %v118_v59  ;;  %701 = vmatprep.subr.mxu1 %v807_v52 }
  0xfc   :  { %696 = vmatprep.subr.mxu0 %v807_v52 }
  0xfd   :  { %694 = vmatmul.mubr.msk.f32.vlgmr.msra.gmra.mrb[2].mxu1 %vm224_vm1, %v221_v60 }
  0xfe   :  { %689 = vmatmul.mubr.msk.f32.vlgmr.msra.gmra.mrb[2].mxu0 %vm224_vm1, %v216_v62  ;;  %702 = vmatpush3.msra.mxu1 %v25_v50 }
  0xff   :  { %697 = vmatpush3.msra.mxu0 %v904_v26  ;;  %698 = vmatprep.mubr.msk.f32.mxu0 %vm808_vm0, %v807_v52 }
 0x100   :  { %703 = vmatprep.mubr.msk.f32.mxu1 %vm808_vm0, %v807_v52 }
 0x1d0   :  { %v373_v63 = vpop.f32.mrb[2].mxu1 }
 0x1d1   :  { %v297_v0 = vpop.f32.mrb[2].mxu0  ;;  %v695_v1 = vpop.f32.mrb[3].mxu1  ;;  %v381_v4 = vsel %vm377_vm2, %v373_v63, -inf }
 0x1d2   :  { %v690_v2 = vpop.f32.mrb[3].mxu0  ;;  %v378_v3 = vsel %vm377_vm2, %v297_v0, -inf }
 0x1d3   :  { %379 = vmax.xlane.f32.xlu0 %v378_v3 }
 0x1d7   :  { %382 = vmax.xlane.f32.xlu0 %v381_v4 }
 0x260   :  { %v380_v5 = vpop.xlane.xlu0 %379 }
 0x261   :  { %v384_v6 = vsub.f32 %v297_v0, %v380_v5 }
 0x263   :  { %v386_v7 = vmul.f32 1.442695, %v384_v6 }
 0x264   :  { %v383_v8 = vpop.xlane.xlu0 %382 }
 0x265   :  { %775 = vpow2.f32 %v386_v7  ;;  %v385_v9 = vsub.f32 %v373_v63, %v383_v8 }
 0x267   :  { %v388_v10 = vmul.f32 1.442695, %v385_v9 }
 0x269   :  { %777 = vpow2.f32 %v388_v10 }
 0x26f   :  { %v776_v11 = vpop.eup %775 }
 0x270   :  { %v390_v12 = vsel %vm377_vm2, %v776_v11, 0.0 }
 0x271   :  { %391 = vadd.xlane.f32.xlu1 %v390_v12 }
 0x273   :  { %v778_v13 = vpop.eup %777 }
 0x274   :  { %v393_v14 = vsel %vm377_vm2, %v778_v13, 0.0 }
 0x275   :  { %394 = vadd.xlane.f32.xlu1 %v393_v14 }
 0x2fe   :  { %v392_v15 = vpop.xlane.xlu1 %391 }
 0x2ff   :  { %779 = vrcp.f32 %v392_v15 }
 0x302   :  { %v395_v16 = vpop.xlane.xlu1 %394 }
 0x303   :  { %781 = vrcp.f32 %v395_v16 }
 0x309   :  { %v780_v17 = vpop.eup %779 }
 0x30a   :  { %v397_v18 = vmul.f32 %v780_v17, %v776_v11 }
 0x30c   :  { %699 = vmatmul.mubr.msk.f32.vlgmr.msra.gmra.mrb[4].mxu0 %vm377_vm2, %v397_v18 }
 0x30d   :  { %v782_v19 = vpop.eup %781 }
 0x30e   :  { %v399_v20 = vmul.f32 %v782_v19, %v778_v13 }
 0x310   :  { %704 = vmatmul.mubr.msk.f32.vlgmr.msra.gmra.mrb[4].mxu1 %vm377_vm2, %v399_v20 }
 0x3df   :  { %v469_v21 = vpop.f32.mrb[4].mxu0 }
 0x3e0   :  { %546 = vst [vmem:[#allocation2] sm:$0xff] %v469_v21  ;;  %v700_v22 = vpop.f32.mrb[5].mxu0 }
 0x3e3   :  { %v542_v23 = vpop.f32.mrb[4].mxu1 }
 0x3e4   :  { %547 = vst [vmem:[#allocation2 + $0x8] sm:$0xff] %v542_v23  ;;  %v705_v24 = vpop.f32.mrb[5].mxu1 }
 0x3e5   :  { %794 = shalt.err (!%p791_p4)
}
 0x3e6   :  { %s795_s24 = scalar_lea.hbm %s993_s6, 256 }
 0x3e7   :  { %p796_p5 = scmp.ne.s32.totalorder %s993_s6, %s795_s24  ;;  %p799_p6 = scmp.lt.u32.totalorder %s795_s24, %s993_s6 }
 0x3e9   :  { %p801_p7 = pnand %p799_p6, %p796_p5 }
 0x3eb   :  { %804 = shalt.err (!%p801_p7)
}
 0x3ec   :  { %s810_s29 = smov 128   ;;  %s811_s30 = smov 8  }
 0x3ed   :  { %559 = dma.vmem_to_hbm [thread:$0]  %s554_s4, 256, %s993_s6, [#allocation3], %s810_s29, %s810_s29, %s811_s30  }
 0x3ee   :  { %805 = dma.done.wait [#allocation3], 256  }
 0x3ef   :  { %806 = vsyncadd [#allocation3], 4294967040 }
 0x3f0   :  { %563 = vsyncpa [#allocation3], 1 }

</bundles_post_ra>
